<compile_context>
chip_gen: v7x
topology: tpu7x:2x2x1
jax: 0.10.0
libtpu: 0.0.40
codegen_flags: <defaults>
</compile_context>

<pallas_src>
import math

import jax
import jax.numpy as jnp
from jax.experimental import pallas as pl
from jax.experimental.pallas import tpu as pltpu

EPS = 1e-06
_LOG_EPS = math.log(EPS)

# Lane tile used only when the row count gets large (kept a multiple of 128).
_LANE_TILE = 2048


def _log_esoftmax_kernel(x_ref, o_ref, *, training: bool):
    # x_ref: (N, tl) tile. Reduction axis (the module's dim=-1) is axis 0
    # (sublanes); the independent rows are dense along the 128-wide lane axis.
    x = x_ref[...].astype(jnp.float32)
    n = x.shape[0]

    # mask: elements strictly below the per-row mean
    mean = jnp.sum(x, axis=0, keepdims=True) * jnp.float32(1.0 / n)
    mask = x < mean

    # log-space esoftmax (Z of the softmax cancels):
    #   log p_i = (x_i - m) + log(offset_i) - log(sum_j exp(x_j - m) * offset_j)
    m = jnp.max(x, axis=0, keepdims=True)
    xs = x - m
    e = jnp.exp(xs)                                      # only full-tile transcendental

    offset = jnp.where(
        mask,
        jnp.float32(EPS) if training else jnp.float32(0.0),
        jnp.float32(1.0),
    )
    denom = jnp.sum(e * offset, axis=0, keepdims=True)   # (1, tl)
    log_denom = jnp.log(denom)                           # one log per row, not per element

    log_offset = jnp.where(
        mask,
        jnp.float32(_LOG_EPS) if training else jnp.float32(-jnp.inf),
        jnp.float32(0.0),
    )

    o_ref[...] = (xs + log_offset - log_denom).astype(o_ref.dtype)


def log_esoftmax_pallas(x: jax.Array, dim: int = -1, training: bool = True) -> jax.Array:
    """LogESoftmax forward. Only dim == -1 (last axis) is supported, matching
    the module's default construction LogESoftmax(dim=-1)."""
    assert dim == -1 or dim == x.ndim - 1, "kernel implements reduction over the last axis"

    orig_shape = x.shape
    N = orig_shape[-1]                 # reduction length -> sublane axis
    M = 1
    for s in orig_shape[:-1]:
        M *= s

    # Lane-dense layout: rows on lanes, reduction on sublanes.
    xt = x.reshape(M, N).T             # (N, M)

    # Single grid step for small problems (whole slab resident in VMEM);
    # tile the lane (row) axis only when M gets large.
    if M > _LANE_TILE and M % _LANE_TILE == 0:
        tl = _LANE_TILE
    else:
        tl = M
    grid = (M // tl,)

    out_t = pl.pallas_call(
        lambda x_ref, o_ref: _log_esoftmax_kernel(x_ref, o_ref, training=training),
        out_shape=jax.ShapeDtypeStruct((N, M), x.dtype),
        grid=grid,
        in_specs=[pl.BlockSpec((N, tl), lambda i: (0, i))],
        out_specs=pl.BlockSpec((N, tl), lambda i: (0, i)),
        compiler_params=pltpu.CompilerParams(
            dimension_semantics=("parallel",)
        ),
    )(xt)

    return out_t.T.reshape(orig_shape)


def _log_esoftmax_ref(x: jax.Array, training: bool = True) -> jax.Array:
    # Pure-JAX reference mirroring the PyTorch code path (direct, non-log-space).
    xf = x.astype(jnp.float32)
    mean = jnp.mean(xf, axis=-1, keepdims=True)
    mask = xf < mean
    offset = jnp.where(mask, jnp.float32(EPS) if training else jnp.float32(0.0), 1.0)
    sm = jax.nn.softmax(xf, axis=-1)
    pu = sm * offset
    p = pu / jnp.sum(pu, axis=-1, keepdims=True)
    return jnp.log(p).astype(x.dtype)


if __name__ == "__main__":
    key = jax.random.PRNGKey(0)
    # NCHW input consistent with a VQVAE feature map; dim=-1 -> reduce over W.
    x = jax.random.normal(key, (2, 4, 16, 16), dtype=jnp.float32)

    out = log_esoftmax_pallas(x, dim=-1, training=True)
    out = jax.block_until_ready(out)

    ref = _log_esoftmax_ref(x, training=True)
    assert out.shape == x.shape and out.dtype == x.dtype
    assert jnp.allclose(out, ref, atol=1e-4, rtol=1e-4), "mismatch vs reference"

    print("KERNEL_OK")
</pallas_src>

<mosaic_0001>
module attributes {stable_mosaic.version = 11 : i64} {
  func.func @_lambda_(%arg0: i32, %arg1: memref<16x128xf32, #tpu.memory_space<vmem>>, %arg2: memref<16x128xf32, #tpu.memory_space<vmem>>) attributes {dimension_semantics = [#tpu.dimension_semantics<parallel>], iteration_bounds = array<i64: 1>, scalar_prefetch = 0 : i64, scratch_operands = 0 : i64, tpu.core_type = #tpu.core_type<tc>, window_params = [{transform_indices = @transform_0, window_bounds = array<i64: 16, 128>}, {transform_indices = @transform_1, window_bounds = array<i64: 16, 128>}]} {
    %c0 = arith.constant 0 : index
    %c0_0 = arith.constant 0 : index
    %0 = vector.load %arg1[%c0, %c0_0] : memref<16x128xf32, #tpu.memory_space<vmem>>, vector<16x128xf32>
    %cst = arith.constant dense<0.000000e+00> : vector<128xf32>
    %1 = vector.multi_reduction <add>, %0, %cst [0] : vector<16x128xf32> to vector<128xf32>
    %2 = vector.shape_cast %1 : vector<128xf32> to vector<1x128xf32>
    %cst_1 = arith.constant 6.250000e-02 : f32
    %3 = vector.broadcast %cst_1 : f32 to vector<1x128xf32>
    %4 = arith.mulf %2, %3 : vector<1x128xf32>
    %5 = vector.broadcast %4 : vector<1x128xf32> to vector<16x128xf32>
    %6 = arith.cmpf olt, %0, %5 : vector<16x128xf32>
    %cst_2 = arith.constant dense<0xFF800000> : vector<128xf32>
    %7 = vector.multi_reduction <maximumf>, %0, %cst_2 [0] : vector<16x128xf32> to vector<128xf32>
    %8 = vector.shape_cast %7 : vector<128xf32> to vector<1x128xf32>
    %9 = vector.broadcast %8 : vector<1x128xf32> to vector<16x128xf32>
    %10 = arith.subf %0, %9 : vector<16x128xf32>
    %11 = math.exp %10 : vector<16x128xf32>
    %cst_3 = arith.constant 9.99999997E-7 : f32
    %cst_4 = arith.constant 1.000000e+00 : f32
    %12 = vector.broadcast %cst_3 : f32 to vector<16x128xf32>
    %13 = vector.broadcast %cst_4 : f32 to vector<16x128xf32>
    %14 = arith.select %6, %12, %13 : vector<16x128xi1>, vector<16x128xf32>
    %15 = arith.mulf %11, %14 : vector<16x128xf32>
    %cst_5 = arith.constant dense<0.000000e+00> : vector<128xf32>
    %16 = vector.multi_reduction <add>, %15, %cst_5 [0] : vector<16x128xf32> to vector<128xf32>
    %17 = vector.shape_cast %16 : vector<128xf32> to vector<1x128xf32>
    %18 = math.log %17 : vector<1x128xf32>
    %cst_6 = arith.constant -13.8155107 : f32
    %cst_7 = arith.constant 0.000000e+00 : f32
    %19 = vector.broadcast %cst_6 : f32 to vector<16x128xf32>
    %20 = vector.broadcast %cst_7 : f32 to vector<16x128xf32>
    %21 = arith.select %6, %19, %20 : vector<16x128xi1>, vector<16x128xf32>
    %22 = arith.addf %10, %21 : vector<16x128xf32>
    %23 = vector.broadcast %18 : vector<1x128xf32> to vector<16x128xf32>
    %24 = arith.subf %22, %23 : vector<16x128xf32>
    %c0_8 = arith.constant 0 : index
    %c0_9 = arith.constant 0 : index
    %25 = vector.load %arg2[%c0_8, %c0_9] : memref<16x128xf32, #tpu.memory_space<vmem>>, vector<16x128xf32>
    tpu.vector_store %arg2[%c0_8, %c0_9], %24 {strides = array<i32>} : memref<16x128xf32, #tpu.memory_space<vmem>>, vector<16x128xf32>,
    return
  }
  func.func @transform_0(%arg0: i32) -> (i32, i32) {
    %c0_i32 = arith.constant 0 : i32
    %c0_i32_0 = arith.constant 0 : i32
    return %c0_i32, %arg0 : i32, i32
  }
  func.func @transform_1(%arg0: i32) -> (i32, i32) {
    %c0_i32 = arith.constant 0 : i32
    %c0_i32_0 = arith.constant 0 : i32
    return %c0_i32, %arg0 : i32, i32
  }
}

</mosaic_0001>

<bundles_post_ra>
// kernel: tpu_custom_call.1
= control target key start
LH: loop header
LB: loop body
LE: loop exit
PB: predicated region body
PF: predicated region fallthrough
CT: control target
= control target key end

     0   :  { %6 = vsyncpa [#allocation3], 0  ;;  %s196_s0 = inlined_call_operand.hbm [shape: f32[16,128], index: 0, kind: input, shape index: {}]   ;;  %s197_s1 = inlined_call_operand.hbm [shape: f32[16,128], index: 1, kind: output, shape index: {}]  }
   0x1   :  { %7 = vsyncpa [#allocation4], 0  ;;  %s146_s6 = smov [#allocation2]   ;;  %s98_s10 = scalar_lea.hbm %s196_s0, 256 }
   0x2   :  { %s13_s7 = sshll.u32 %s146_s6, 4  ;;  %p99_p0 = scmp.ne.s32.totalorder %s196_s0, %s98_s10  ;;  %s14_s7 = int_to_ptr.vmem [resolvable:$true] %s13_s7 }
   0x3   :  { %p102_p1 = scmp.lt.u32.totalorder %s98_s10, %s196_s0 }
   0x5   :  { %p104_p2 = pnand %p102_p1, %p99_p0 }
   0x7   :  { %107 = shalt.err (!%p104_p2)
}
   0x8   :  { %s108_s15 = scalar_lea.vmem %s14_s7, 256  ;;  %p113_p4 = scmp.lt.s32.totalorder %s14_s7, %s14_s7 }
   0x9   :  { %p109_p3 = scmp.ne.s32.totalorder %s14_s7, %s108_s15  ;;  %p114_p5 = scmp.lt.s32.totalorder %s108_s15, %s108_s15 }
   0xb   :  { %p115_p6 = por %p114_p5, %p113_p4 }
   0xd   :  { %p116_p7 = pnand %p115_p6, %p109_p3 }
   0xf   :  { %119 = shalt.err (!%p116_p7)
}
  0x10   :  { %s147_s16 = smov 128   ;;  %s148_s17 = smov 8  }
  0x11   :  { %19 = dma.hbm_to_vmem [thread:$0]  %s196_s0, 256, %s14_s7, [#allocation3], %s147_s16, %s147_s16, %s148_s17  }
  0x12   :  { %142 = dma.done.wait [#allocation3], 256  }
  0x13   :  { %143 = vsyncadd [#allocation3], 4294967040  ;;  %v23_v0 = vld [vmem:[#allocation2] sm:$0xff]  ;;  %v24_v1 = vld [vmem:[#allocation2 + $0x8] sm:$0xff]  ;;  %v149_v21 = vmov 1.0   ;;  %v150_v35 = vmov 0.0  }
  0x14   :  { %v25_v2 = vadd.f32 %v24_v1, %v23_v0  ;;  %v35_v3 = vmax.f32 %v23_v0, %v24_v1  ;;  %s151_s0 = smov [#allocation5]  }
  0x15   :  { %s74_s20 = sshll.u32 %s151_s0, 4  ;;  %s75_s20 = int_to_ptr.vmem [resolvable:$true] %s74_s20 }
  0x16   :  { %v26_v4 = vrot.slane %v25_v2, 4  ;;  %v36_v5 = vrot.slane %v35_v3, 4  ;;  %s120_s21 = scalar_lea.vmem %s75_s20, 256  ;;  %p125_p9 = scmp.lt.s32.totalorder %s75_s20, %s75_s20 }
  0x17   :  { %p121_p8 = scmp.ne.s32.totalorder %s75_s20, %s120_s21  ;;  %p126_p10 = scmp.lt.s32.totalorder %s120_s21, %s120_s21 }
  0x18   :  { %v27_v6 = vadd.f32 %v26_v4, %v25_v2  ;;  %v37_v7 = vmax.f32 %v35_v3, %v36_v5 }
  0x19   :  { %p127_p11 = por %p126_p10, %p125_p9 }
  0x1a   :  { %v28_v8 = vrot.slane %v27_v6, 2  ;;  %v38_v9 = vrot.slane %v37_v7, 2 }
  0x1b   :  { %p128_p12 = pnand %p127_p11, %p121_p8 }
  0x1c   :  { %v29_v10 = vadd.f32 %v28_v8, %v27_v6  ;;  %v39_v11 = vmax.f32 %v37_v7, %v38_v9 }
  0x1e   :  { %v40_v12 = vrot.slane %v39_v11, 1  ;;  %v30_v13 = vrot.slane %v29_v10, 1 }
  0x20   :  { %v41_v14 = vmax.f32 %v39_v11, %v40_v12  ;;  %v31_v17 = vadd.f32 %v30_v13, %v29_v10 }
  0x22   :  { %v42_v15 = vsub.f32 %v23_v0, %v41_v14  ;;  %v43_v16 = vsub.f32 %v24_v1, %v41_v14  ;;  %v32_v20 = vmul.f32 0.0625, %v31_v17 }
  0x24   :  { %v44_v18 = vmul.f32 1.442695, %v42_v15  ;;  %v46_v19 = vmul.f32 1.442695, %v43_v16  ;;  %vm33_vm0 = vcmp.lt.f32.partialorder %v23_v0, %v32_v20  ;;  %vm34_vm1 = vcmp.lt.f32.partialorder %v24_v1, %v32_v20 }
  0x25   :  { %v48_v22 = vsel %vm33_vm0, 1e-06, %v149_v21  ;;  %v49_v23 = vsel %vm34_vm1, 1e-06, %v149_v21  ;;  %v61_v36 = vsel %vm33_vm0, -13.815511, %v150_v35 }
  0x26   :  { %92 = vpow2.f32 %v44_v18  ;;  %v62_v37 = vsel %vm34_vm1, -13.815511, %v150_v35  ;;  %v63_v38 = vadd.f32 %v61_v36, %v42_v15 }
  0x27   :  { %94 = vpow2.f32 %v46_v19  ;;  %v64_v39 = vadd.f32 %v62_v37, %v43_v16 }
  0x30   :  { %v93_v24 = vpop.eup %92 }
  0x31   :  { %v95_v25 = vpop.eup %94  ;;  %v50_v26 = vmul.f32 %v93_v24, %v48_v22 }
  0x32   :  { %v51_v27 = vmul.f32 %v95_v25, %v49_v23 }
  0x34   :  { %v52_v28 = vadd.f32 %v51_v27, %v50_v26 }
  0x36   :  { %v53_v29 = vrot.slane %v52_v28, 4 }
  0x38   :  { %v54_v30 = vadd.f32 %v53_v29, %v52_v28 }
  0x3a   :  { %v55_v31 = vrot.slane %v54_v30, 2 }
  0x3c   :  { %v56_v32 = vadd.f32 %v55_v31, %v54_v30 }
  0x3e   :  { %v57_v33 = vrot.slane %v56_v32, 1 }
  0x40   :  { %v58_v34 = vadd.f32 %v57_v33, %v56_v32 }
  0x42   :  { %96 = vlog2.f32 %v58_v34 }
  0x4c   :  { %v97_v40 = vpop.eup %96 }
  0x4d   :  { %v60_v41 = vmul.f32 0.6931472, %v97_v40 }
  0x4f   :  { %v65_v42 = vsub.f32 %v63_v38, %v60_v41  ;;  %v66_v43 = vsub.f32 %v64_v39, %v60_v41 }
  0x51   :  { %67 = vst [vmem:[#allocation5] sm:$0xff] %v65_v42  ;;  %68 = vst [vmem:[#allocation5 + $0x8] sm:$0xff] %v66_v43 }
  0x52   :  { %131 = shalt.err (!%p128_p12)
}
  0x53   :  { %s132_s24 = scalar_lea.hbm %s197_s1, 256 }
  0x54   :  { %p133_p13 = scmp.ne.s32.totalorder %s197_s1, %s132_s24  ;;  %p136_p0 = scmp.lt.u32.totalorder %s132_s24, %s197_s1 }
  0x56   :  { %p138_p1 = pnand %p136_p0, %p133_p13 }
  0x58   :  { %141 = shalt.err (!%p138_p1)
}
  0x59   :  { %80 = dma.vmem_to_hbm [thread:$0]  %s75_s20, 256, %s197_s1, [#allocation4], %s147_s16, %s147_s16, %s148_s17  }
  0x5a   :  { %144 = dma.done.wait [#allocation4], 256  }
  0x5b   :  { %145 = vsyncadd [#allocation4], 4294967040 }
  0x5c   :  { %84 = vsyncpa [#allocation3], 1 }
  0x5d   :  { %85 = vsyncpa [#allocation4], 1 }

</bundles_post_ra>
